<compile_context>
chip_gen: v7x
topology: tpu7x:2x2x1
jax: 0.10.0
libtpu: 0.0.40
codegen_flags: <defaults>
</compile_context>

<pallas_src>
import functools
import math

import jax
import jax.numpy as jnp
from jax.experimental import pallas as pl
from jax.experimental.pallas import tpu as pltpu


def gfp_kernel(x_ref, w_ref, out_ref, *, emb, chunk):
    """One batch tile of the Gaussian Fourier embedding.

    x_ref:   (TB, 1)   noise levels for this batch tile (f32)
    w_ref:   (1, E)    fixed Gaussian projection weights (f32, non-trainable)
    out_ref: (TB, 2E)  [ sin(2*pi*x*W) | cos(2*pi*x*W) ] cast to out dtype
    """
    w2pi = w_ref[...] * (2.0 * math.pi)        # (1, E) — hoisted, once per tile
    tb = x_ref.shape[0]

    def emit(row0, rows):
        # rows x E f32 working set only; static offsets -> aligned slices.
        proj = x_ref[pl.ds(row0, rows), :] * w2pi            # VPU broadcast mul
        out_ref[pl.ds(row0, rows), pl.ds(0, emb)] = (
            jnp.sin(proj).astype(out_ref.dtype))             # slab store @ lane 0
        out_ref[pl.ds(row0, rows), pl.ds(emb, emb)] = (
            jnp.cos(proj).astype(out_ref.dtype))             # slab store @ lane E

    # Sublane-chunked walk of the batch tile: bounds the live range of `proj`
    # to <= chunk*E f32 elements while stores stay full-width slabs.
    nfull, rem = divmod(tb, chunk)
    for c in range(nfull):
        emit(c * chunk, chunk)
    if rem:
        emit(nfull * chunk, rem)


def _round_up(n, m):
    return ((n + m - 1) // m) * m


def _pick_batch_tile(B, target=512):
    """Batch-tile heuristic:
       * large enough per step to amortize the ~0.35us/step pipeline cost,
       * >=2 grid steps whenever B allows it (both v7x TensorCores get work),
       * multiple of 8 (sublane constraint)."""
    if B <= 8:
        return 8
    half = _round_up(-(-B // 2), 8)            # ceil(B/2), rounded to sublane
    return min(target, half)


def gaussian_fourier_projection(x, W, *, batch_tile=None, out_dtype=jnp.float32):
    """x: (B,) noise levels; W: (E,) fixed weights -> (B, 2E) embedding."""
    B = x.shape[0]
    E = W.shape[0]

    tb = batch_tile if batch_tile is not None else _pick_batch_tile(B)
    tb = _round_up(min(tb, max(B, 8)), 8)
    chunk = min(tb, 128)                       # <=128 rows of proj live at once

    # Pad the batch to a multiple of tb (padded last tile instead of the old
    # tb=B fallback, which could spill vregs / overrun scoped VMEM for large B).
    Bp = _round_up(B, tb)
    x2 = jnp.zeros((Bp, 1), jnp.float32).at[:B, 0].set(x.astype(jnp.float32))
    w2 = W.reshape(1, E).astype(jnp.float32)

    # Per-step VMEM footprint (output dominates; double buffered) must stay
    # well inside the 32 MiB default scoped VMEM (v7x: 64 MiB physical).
    out_block_bytes = tb * 2 * E * jnp.dtype(out_dtype).itemsize
    assert 2 * out_block_bytes < 16 * 1024 * 1024, "batch_tile too large for VMEM"

    kernel = functools.partial(gfp_kernel, emb=E, chunk=chunk)
    out = pl.pallas_call(
        kernel,
        out_shape=jax.ShapeDtypeStruct((Bp, 2 * E), out_dtype),
        grid=(Bp // tb,),
        in_specs=[
            pl.BlockSpec((tb, 1), lambda i: (i, 0)),   # per-tile noise levels
            pl.BlockSpec((1, E), lambda i: (0, 0)),    # shared weight row
        ],
        out_specs=pl.BlockSpec((tb, 2 * E), lambda i: (i, 0)),
        # Shards grid steps across TensorCores on v7x; no-op on v5e/v6e.
        compiler_params=pltpu.CompilerParams(
            dimension_semantics=("parallel",)),
    )(x2, w2)
    return out[:B] if Bp != B else out


# ----------------------------- pure-JAX reference -----------------------------
def reference_forward(x, W):
    proj = x[:, None] * W[None, :] * 2.0 * math.pi
    return jnp.concatenate([jnp.sin(proj), jnp.cos(proj)], axis=-1)


if __name__ == "__main__":
    key = jax.random.PRNGKey(0)
    k1, k2 = jax.random.split(key)

    # embedding_size = 256 (module default), scale = 1.0, batch = 8 noise levels
    B, E, scale = 8, 256, 1.0
    x = jax.random.normal(k1, (B,), jnp.float32)
    W = scale * jax.random.normal(k2, (E,), jnp.float32)   # requires_grad=False buffer

    out = jax.block_until_ready(gaussian_fourier_projection(x, W))
    assert out.shape == (B, 2 * E)
    ref = jax.block_until_ready(reference_forward(x, W))
    max_err = float(jnp.max(jnp.abs(out - ref)))
    if max_err > 1e-3:
        raise AssertionError(f"Pallas kernel mismatch vs reference, max abs err={max_err}")

    # Second check: non-divisible batch exercising the padded-last-tile path
    # (>=2 grid steps, remainder sublane chunk inside the kernel).
    B2 = 300
    x_big = jax.random.normal(jax.random.PRNGKey(1), (B2,), jnp.float32)
    out2 = jax.block_until_ready(gaussian_fourier_projection(x_big, W))
    assert out2.shape == (B2, 2 * E)
    ref2 = reference_forward(x_big, W)
    max_err2 = float(jnp.max(jnp.abs(out2 - ref2)))
    if max_err2 > 1e-3:
        raise AssertionError(f"Pallas kernel mismatch (padded path), max abs err={max_err2}")

    print("KERNEL_OK")
</pallas_src>

<mosaic_0001>
module attributes {stable_mosaic.version = 11 : i64} {
  func.func @gfp_kernel(%arg0: i32, %arg1: memref<8x1xf32, #tpu.memory_space<vmem>>, %arg2: memref<1x256xf32, #tpu.memory_space<vmem>>, %arg3: memref<8x512xf32, #tpu.memory_space<vmem>>) attributes {dimension_semantics = [#tpu.dimension_semantics<parallel>], iteration_bounds = array<i64: 1>, scalar_prefetch = 0 : i64, scratch_operands = 0 : i64, tpu.core_type = #tpu.core_type<tc>, window_params = [{transform_indices = @transform_0, window_bounds = array<i64: 8, 1>}, {pipeline_mode = #tpu.pipeline_mode<synchronous>, transform_indices = @transform_1, window_bounds = array<i64: 1, 256>}, {transform_indices = @transform_2, window_bounds = array<i64: 8, 512>}]} {
    %c0 = arith.constant 0 : index
    %c0_0 = arith.constant 0 : index
    %0 = vector.load %arg2[%c0, %c0_0] : memref<1x256xf32, #tpu.memory_space<vmem>>, vector<1x256xf32>
    %cst = arith.constant 6.28318548 : f32
    %1 = vector.broadcast %cst : f32 to vector<1x256xf32>
    %2 = arith.mulf %0, %1 : vector<1x256xf32>
    %c0_1 = arith.constant 0 : index
    %c0_2 = arith.constant 0 : index
    %3 = vector.load %arg1[%c0_1, %c0_2] : memref<8x1xf32, #tpu.memory_space<vmem>>, vector<8x1xf32>
    %4 = vector.broadcast %3 : vector<8x1xf32> to vector<8x256xf32>
    %5 = vector.broadcast %2 : vector<1x256xf32> to vector<8x256xf32>
    %6 = arith.mulf %4, %5 : vector<8x256xf32>
    %7 = math.sin %6 : vector<8x256xf32>
    %c0_3 = arith.constant 0 : index
    %c0_4 = arith.constant 0 : index
    %8 = vector.load %arg3[%c0_3, %c0_4] : memref<8x512xf32, #tpu.memory_space<vmem>>, vector<8x256xf32>
    tpu.vector_store %arg3[%c0_3, %c0_4], %7 {strides = array<i32>} : memref<8x512xf32, #tpu.memory_space<vmem>>, vector<8x256xf32>,
    %9 = math.cos %6 : vector<8x256xf32>
    %c0_5 = arith.constant 0 : index
    %c256 = arith.constant 256 : index
    %10 = vector.load %arg3[%c0_5, %c256] : memref<8x512xf32, #tpu.memory_space<vmem>>, vector<8x256xf32>
    tpu.vector_store %arg3[%c0_5, %c256], %9 {strides = array<i32>} : memref<8x512xf32, #tpu.memory_space<vmem>>, vector<8x256xf32>,
    return
  }
  func.func @transform_0(%arg0: i32) -> (i32, i32) {
    %c0_i32 = arith.constant 0 : i32
    %c0_i32_0 = arith.constant 0 : i32
    return %arg0, %c0_i32 : i32, i32
  }
  func.func @transform_1(%arg0: i32) -> (i32, i32) {
    %c0_i32 = arith.constant 0 : i32
    %c0_i32_0 = arith.constant 0 : i32
    %c0_i32_1 = arith.constant 0 : i32
    return %c0_i32, %c0_i32_0 : i32, i32
  }
  func.func @transform_2(%arg0: i32) -> (i32, i32) {
    %c0_i32 = arith.constant 0 : i32
    %c0_i32_0 = arith.constant 0 : i32
    return %arg0, %c0_i32 : i32, i32
  }
}

</mosaic_0001>

<bundles_post_ra>
// kernel: tpu_custom_call.1
= control target key start
LH: loop header
LB: loop body
LE: loop exit
PB: predicated region body
PF: predicated region fallthrough
CT: control target
= control target key end

     0   :  { %v530_v1 = vmov 0   ;;  %s633_s0 = inlined_call_operand.vmem [shape: f32[8,1], index: 0, kind: input, shape index: {}]   ;;  %s634_s1 = inlined_call_operand.vmem [shape: f32[1,256], index: 1, kind: input, shape index: {}]   ;;  %s635_s2 = inlined_call_operand.hbm [shape: f32[8,512], index: 2, kind: output, shape index: {}]  }
   0x1   :  { %v14_v0 = vld [vmem:[%s633_s0] sm:$0xff]  ;;  %497 = vset.pattern.permute.xlu0 %v530_v1 }
   0x2   :  { %17 = vperm.xlu0 %497, %v14_v0  }
   0x3   :  { %7 = vsyncpa [#allocation3], 0  ;;  %v21_v2 = vlaneseq  ;;  %v12_v4 = vld [vmem:[%s634_s1] sm:$0x3]  ;;  %v531_v33 = vmov 683565275  }
   0x4   :  { %v13_v7 = vmul.f32 6.2831855, %v12_v4  ;;  %v532_v37 = vmov 2475754826   ;;  %v533_v39 = vmov 2131351028  }
   0x5   :  { %v22_v3 = vshrl.u32 %v21_v2, 7  ;;  %v534_v41 = vmov 2102212464   ;;  %v535_v43 = vmov 920167782   ;;  %s537_s0 = smov [#allocation2]  }
   0x6   :  { %v536_v50 = vmov 1326507024   ;;  %s457_s1 = sshll.u32 %s537_s0, 4  ;;  %s458_s1 = int_to_ptr.vmem [resolvable:$true] %s457_s1 }
   0x7   :  { %v23_v5 = vsub.s32 0, %v22_v3  ;;  %v27_v6 = vsub.s32 1, %v22_v3  ;;  %s506_s13 = scalar_lea.vmem %s458_s1, 512  ;;  %p511_p1 = scmp.lt.s32.totalorder %s458_s1, %s458_s1 }
   0x8   :  { %p507_p0 = scmp.ne.s32.totalorder %s458_s1, %s506_s13  ;;  %p512_p2 = scmp.lt.s32.totalorder %s506_s13, %s506_s13 }
   0x9   :  { %v24_v8 = vrot.slane %v13_v7, %v23_v5  ;;  %v28_v9 = vrot.slane %v13_v7, %v27_v6 }
   0xa   :  { %p513_p3 = por %p512_p2, %p511_p1 }
   0xc   :  { %p514_p4 = pnand %p513_p3, %p507_p0 }
  0x81   :  { %v18_v10 = vpop.permute.xlu0 %17 }
  0x82   :  { %v559_v11 = vmul.f32 %v24_v8, %v18_v10  ;;  %v561_v12 = vmul.f32 %v28_v9, %v18_v10 }
  0x84   :  { %v33_v13 = vand.u32 2147483647, %v559_v11  ;;  %v36_v14 = vand.u32 2139095040, %v559_v11  ;;  %v140_v15 = vand.u32 2139095040, %v561_v12  ;;  %v137_v18 = vand.u32 2147483647, %v561_v12 }
  0x85   :  { %vm35_vm14 = vcmp.lt.s32.totalorder %v559_v11, 0 }
  0x86   :  { %v37_v16 = vshrl.u32 %v36_v14, 23  ;;  %v40_v17 = vand.u32 8388607, %v33_v13  ;;  %v141_v19 = vshrl.u32 %v140_v15, 23  ;;  %v571_v24 = vand.u32 8388607, %v137_v18 }
  0x87   :  { %vm34_vm15 = vcmp.le.f32.partialorder %v33_v13, 0.7853982 }
  0x88   :  { %v465_v20 = vadd.s32 4294967169, %v37_v16  ;;  %v469_v21 = vadd.s32 4294967169, %v141_v19  ;;  %v41_v23 = vor.u32 8388608, %v40_v17  ;;  %v145_v31 = vor.u32 8388608, %v571_v24 }
  0x8a   :  { %v43_v22 = vadd.s32 1, %v465_v20  ;;  %v147_v25 = vadd.s32 1, %v469_v21  ;;  %v573_v30 = vshll.u32 %v41_v23, 8 }
  0x8c   :  { %vm44_vm0 = vcmp.gt.s32.totalorder %v43_v22, 0  ;;  %vm148_vm1 = vcmp.gt.s32.totalorder %v147_v25, 0 }
  0x8d   :  { %v45_v26 = vsel %vm44_vm0, %v43_v22, 0  ;;  %v149_v29 = vsel %vm148_vm1, %v147_v25, 0  ;;  %v185_v25 = vshll.u32 %v145_v31, 8  ;;  %vm139_vm0 = vcmp.lt.s32.totalorder %v561_v12, 0 }
  0x8e   :  { %v46_v27 = vshrl.u32 %v45_v26, 5  ;;  %v47_v28 = vand.u32 31, %v45_v26  ;;  %v576_v35 = vshrl.u32 %v149_v29, 5  ;;  %v151_v36 = vand.u32 31, %v149_v29 }
  0x8f   :  { %vm138_vm1 = vcmp.le.f32.partialorder %v137_v18, 0.7853982 }
  0x90   :  { %v48_v32 = vsub.s32 32, %v47_v28  ;;  %v50_v34 = vshll.u32 %v531_v33, %v47_v28  ;;  %v53_v38 = vshll.u32 %v532_v37, %v47_v28  ;;  %v56_v40 = vshll.u32 %v533_v39, %v47_v28 }
  0x91   :  { %v59_v42 = vshll.u32 %v534_v41, %v47_v28  ;;  %v62_v44 = vshll.u32 %v535_v43, %v47_v28  ;;  %vm65_vm2 = vcmp.lt.s32.totalorder %v46_v27, 1  ;;  %vm66_vm3 = vcmp.lt.s32.totalorder %v46_v27, 2 }
  0x92   :  { %v51_v45 = vshrl.u32 %v532_v37, %v48_v32  ;;  %v54_v46 = vshrl.u32 %v533_v39, %v48_v32  ;;  %v57_v47 = vshrl.u32 %v534_v41, %v48_v32  ;;  %v49_v48 = vshrl.u32 %v531_v33, %v48_v32 }
  0x93   :  { %v60_v49 = vshrl.u32 %v535_v43, %v48_v32  ;;  %v63_v51 = vshrl.u32 %v536_v50, %v48_v32  ;;  %v152_v55 = vsub.s32 32, %v151_v36  ;;  %vm67_vm4 = vcmp.lt.s32.totalorder %v46_v27, 3 }
  0x94   :  { %v52_v52 = vor.u32 %v51_v45, %v50_v34  ;;  %v55_v53 = vor.u32 %v54_v46, %v53_v38  ;;  %v58_v54 = vor.u32 %v57_v47, %v56_v40  ;;  %vm68_vm5 = vcmp.lt.s32.totalorder %v46_v27, 4 }
  0x95   :  { %v61_v56 = vor.u32 %v60_v49, %v59_v42  ;;  %v64_v57 = vor.u32 %v63_v51, %v62_v44  ;;  %v154_v1 = vshll.u32 %v531_v33, %v151_v36  ;;  %v155_v4 = vshrl.u32 %v532_v37, %v152_v55 }
  0x96   :  { %v69_v58 = vsel %vm65_vm2, %v49_v48, %v52_v52  ;;  %v70_v59 = vsel %vm68_vm5, %v58_v54, 2102212464  ;;  %v73_v60 = vsel %vm65_vm2, %v52_v52, %v55_v53  ;;  %v77_v61 = vsel %vm65_vm2, %v55_v53, %v58_v54 }
  0x97   :  { %v71_v62 = vsel %vm67_vm4, %v55_v53, %v70_v59  ;;  %v74_v63 = vsel %vm68_vm5, %v61_v56, 920167782  ;;  %v78_v0 = vsel %vm68_vm5, %v64_v57, 1326507024  ;;  %v157_v5 = vshll.u32 %v532_v37, %v151_v36 }
  0x98   :  { %v75_v2 = vsel %vm67_vm4, %v58_v54, %v74_v63  ;;  %v79_v3 = vsel %vm67_vm4, %v61_v56, %v78_v0  ;;  %v72_v6 = vsel %vm66_vm3, %v69_v58, %v71_v62  ;;  %v158_v9 = vshrl.u32 %v533_v39, %v152_v55 }
  0x99   :  { %v76_v7 = vsel %vm66_vm3, %v73_v60, %v75_v2  ;;  %v80_v8 = vsel %vm66_vm3, %v77_v61, %v79_v3  ;;  %v156_v17 = vor.u32 %v155_v4, %v154_v1  ;;  %v160_v20 = vshll.u32 %v533_v39, %v151_v36 }
  0x9a   :  { %v585_v10 = vmul.u32.u64.low %v573_v30, %v80_v8  ;;  %v586_v14 = vmul.u32.u64.high %v573_v30, %v80_v8, %v585_v10  ;;  %v589_v15 = vmul.u32.u64.low %v573_v30, %v76_v7  ;;  %v590_v16 = vmul.u32.u64.high %v573_v30, %v76_v7, %v589_v15 }
  0x9b   :  { %v159_v19 = vor.u32 %v158_v9, %v157_v5  ;;  %v161_v21 = vshrl.u32 %v534_v41, %v152_v55  ;;  %v163_v22 = vshll.u32 %v534_v41, %v151_v36  ;;  %v164_v23 = vshrl.u32 %v535_v43, %v152_v55 }
  0x9c   :  { %v167_v24 = vshrl.u32 %v536_v50, %v152_v55  ;;  %v88_v26 = vmul.u32 %v573_v30, %v72_v6  ;;  %v153_v27 = vshrl.u32 %v531_v33, %v152_v55  ;;  %v166_v29 = vshll.u32 %v535_v43, %v151_v36 }
  0x9d   :  { %v162_v28 = vor.u32 %v161_v21, %v160_v20  ;;  %vm90_vm6 = vc.u32 %v586_v14, %v589_v15  ;;  %v91_v32 = vadd.s32 1, %v590_v16  ;;  %v165_v34 = vor.u32 %v164_v23, %v163_v22 }
  0x9e   :  { %vm169_vm7 = vcmp.lt.s32.totalorder %v576_v35, 1  ;;  %v168_v37 = vor.u32 %v167_v24, %v166_v29  ;;  %vm171_vm8 = vcmp.lt.s32.totalorder %v576_v35, 3  ;;  %vm172_vm9 = vcmp.lt.s32.totalorder %v576_v35, 4 }
  0x9f   :  { %v177_v38 = vsel %vm169_vm7, %v156_v17, %v159_v19  ;;  %v92_v31 = vsel %vm90_vm6, %v91_v32, %v590_v16  ;;  %v174_v39 = vsel %vm172_vm9, %v162_v28, 2102212464  ;;  %v178_v30 = vsel %vm172_vm9, %v165_v34, 920167782 }
  0xa0   :  { %v181_v33 = vsel %vm169_vm7, %v159_v19, %v162_v28  ;;  %v93_v40 = vadd.s32 %v92_v31, %v88_v26  ;;  %vm170_vm10 = vcmp.lt.s32.totalorder %v576_v35, 2  ;;  %v179_v36 = vsel %vm171_vm8, %v162_v28, %v178_v30 }
  0xa1   :  { %v182_v41 = vsel %vm172_vm9, %v168_v37, 1326507024  ;;  %v173_v42 = vsel %vm169_vm7, %v153_v27, %v156_v17  ;;  %v175_v43 = vsel %vm171_vm8, %v159_v19, %v174_v39  ;;  %v180_v44 = vsel %vm170_vm10, %v177_v38, %v179_v36 }
  0xa2   :  { %v183_v45 = vsel %vm171_vm8, %v165_v34, %v182_v41  ;;  %v94_v46 = vadd.s32 536870912, %v93_v40  ;;  %v600_v48 = vmul.u32.u64.low %v185_v25, %v180_v44  ;;  %v601_v49 = vmul.u32.u64.high %v185_v25, %v180_v44, %v600_v48 }
  0xa3   :  { %v184_v47 = vsel %vm170_vm10, %v181_v33, %v183_v45  ;;  %v176_v53 = vsel %vm170_vm10, %v173_v42, %v175_v43  ;;  %v89_v5 = vadd.s32 %v589_v15, %v586_v14  ;;  %vm125_vm8 = vweird.f32 %v559_v11 }
  0xa4   :  { %v603_v50 = vmul.u32.u64.low %v185_v25, %v184_v47  ;;  %v604_v51 = vmul.u32.u64.high %v185_v25, %v184_v47, %v603_v50  ;;  %v95_v52 = vshrl.u32 %v94_v46, 30  ;;  %v195_v55 = vadd.s32 1, %v601_v49 }
  0xa5   :  { %v192_v35 = vmul.u32 %v185_v25, %v176_v53 }
  0xa6   :  { %v96_v54 = vshll.u32 %v95_v52, 30  ;;  %vm194_vm11 = vc.u32 %v604_v51, %v600_v48  ;;  %v193_v26 = vadd.s32 %v600_v48, %v604_v51  ;;  %v119_v15 = vsub.s32 4, %v95_v52 }
  0xa7   :  { %v196_v57 = vsel %vm194_vm11, %v195_v55, %v601_v49 }
  0xa8   :  { %v97_v56 = vsub.s32 %v93_v40, %v96_v54  ;;  %v197_v58 = vadd.s32 %v196_v57, %v192_v35  ;;  %v120_v30 = vsel %vm35_vm14, %v119_v15, %v95_v52 }
  0xa9   :  { %v122_v36 = vsel %vm34_vm15, 0, %v120_v30 }
  0xaa   :  { %v99_v59 = vsub.s32 0, %v97_v56  ;;  %v198_v60 = vadd.s32 536870912, %v197_v58  ;;  %v126_v45 = vadd.s32 3, %v122_v36  ;;  %v336_v50 = vand.u32 3, %v122_v36 }
  0xac   :  { %v466_v61 = vmin.u32 %v99_v59, %v97_v56  ;;  %v199_v62 = vshrl.u32 %v198_v60, 30  ;;  %v127_v49 = vand.u32 3, %v126_v45  ;;  %vm338_vm3 = vcmp.eq.s32.totalorder %v336_v50, 0 }
  0xad   :  { %vm341_vm4 = vcmp.eq.s32.totalorder %v336_v50, 2  ;;  %vm337_vm7 = vcmp.lt.s32.totalorder %v336_v50, 2 }
  0xae   :  { %v101_v63 = vclz %v466_v61  ;;  %v200_v0 = vshll.u32 %v199_v62, 30  ;;  %v223_v44 = vsub.s32 4, %v199_v62  ;;  %vm132_vm2 = vcmp.eq.s32.totalorder %v127_v49, 2 }
  0xaf   :  { %vm129_vm5 = vcmp.eq.s32.totalorder %v127_v49, 0  ;;  %vm128_vm6 = vcmp.lt.s32.totalorder %v127_v49, 2 }
  0xb0   :  { %v467_v1 = vadd.s32 4294967294, %v101_v63  ;;  %v201_v2 = vsub.s32 %v197_v58, %v200_v0  ;;  %v224_v47 = vsel %vm139_vm0, %v223_v44, %v199_v62 }
  0xb1   :  { %v226_v52 = vsel %vm138_vm1, 0, %v224_v47 }
  0xb2   :  { %vm468_vm12 = vcmp.lt.s32.totalorder %v467_v1, 0  ;;  %v203_v4 = vsub.s32 0, %v201_v2  ;;  %v439_v0 = vand.u32 3, %v226_v52 }
  0xb3   :  { %v104_v3 = vsel %vm468_vm12, 0, %v467_v1 }
  0xb4   :  { %v105_v6 = vsub.s32 32, %v104_v3  ;;  %v109_v7 = vsub.s32 4294967266, %v104_v3  ;;  %v470_v8 = vmin.u32 %v203_v4, %v201_v2  ;;  %v106_v9 = vshll.u32 %v97_v56, %v104_v3 }
  0xb5   :  { %v230_v56 = vadd.s32 3, %v226_v52  ;;  %vm444_vm10 = vcmp.eq.s32.totalorder %v439_v0, 2  ;;  %vm441_vm12 = vcmp.eq.s32.totalorder %v439_v0, 0 }
  0xb6   :  { %v107_v10 = vshrl.u32 %v89_v5, %v105_v6  ;;  %v110_v16 = vadd.s32 127, %v109_v7  ;;  %v205_v17 = vclz %v470_v8 }
  0xb7   :  { %v231_v63 = vand.u32 3, %v230_v56 }
  0xb8   :  { %v108_v19 = vor.u32 %v107_v10, %v106_v9  ;;  %v111_v20 = vshll.u32 %v110_v16, 23  ;;  %v471_v21 = vadd.s32 4294967294, %v205_v17 }
  0xb9   :  { %vm236_vm9 = vcmp.eq.s32.totalorder %v231_v63, 2  ;;  %vm233_vm11 = vcmp.eq.s32.totalorder %v231_v63, 0 }
  0xba   :  { %v112_v22 = vor.u32 4788187, %v111_v20  ;;  %vm472_vm13 = vcmp.lt.s32.totalorder %v471_v21, 0  ;;  %v115_v24 = vcvt.s32.f32 %v108_v19 }
  0xbb   :  { %v208_v25 = vsel %vm472_vm13, 0, %v471_v21  ;;  %vm232_vm13 = vcmp.lt.s32.totalorder %v231_v63, 2 }
  0xbc   :  { %v113_v23 = vand.u32 2147483647, %v112_v22  ;;  %v209_v27 = vsub.s32 32, %v208_v25  ;;  %v213_v28 = vsub.s32 4294967266, %v208_v25  ;;  %v210_v29 = vshll.u32 %v201_v2, %v208_v25 }
  0xbe   :  { %v116_v14 = vmul.f32 %v115_v24, %v113_v23  ;;  %v211_v32 = vshrl.u32 %v193_v26, %v209_v27  ;;  %v214_v34 = vadd.s32 127, %v213_v28 }
  0xc0   :  { %v117_v37 = vxor.u32 2147483648, %v116_v14  ;;  %v212_v38 = vor.u32 %v211_v32, %v210_v29  ;;  %v215_v31 = vshll.u32 %v214_v34, 23 }
  0xc2   :  { %v118_v39 = vsel %vm35_vm14, %v117_v37, %v116_v14  ;;  %v216_v40 = vor.u32 4788187, %v215_v31  ;;  %v219_v42 = vcvt.s32.f32 %v212_v38  ;;  %vm440_vm14 = vcmp.lt.s32.totalorder %v439_v0, 2 }
  0xc3   :  { %v121_v33 = vsel %vm34_vm15, %v559_v11, %v118_v39  ;;  %vm229_vm15 = vweird.f32 %v561_v12 }
  0xc4   :  { %498 = vcosq.f32 %v121_v33  ;;  %v217_v41 = vand.u32 2147483647, %v216_v40 }
  0xc5   :  { %500 = vsinq.f32 %v121_v33 }
  0xc6   :  { %v220_v43 = vmul.f32 %v219_v42, %v217_v41 }
  0xc8   :  { %v221_v46 = vxor.u32 2147483648, %v220_v43 }
  0xca   :  { %v222_v13 = vsel %vm139_vm0, %v221_v46, %v220_v43 }
  0xcb   :  { %v225_v48 = vsel %vm138_vm1, %v561_v12, %v222_v13 }
  0xcc   :  { %502 = vcosq.f32 %v225_v48 }
  0xcd   :  { %504 = vsinq.f32 %v225_v48 }
  0xce   :  { %v499_v51 = vpop.eup %498 }
  0xcf   :  { %v501_v53 = vpop.eup %500  ;;  %v133_v54 = vxor.u32 2147483648, %v499_v51 }
  0xd0   :  { %v130_v55 = vxor.u32 2147483648, %v501_v53 }
  0xd1   :  { %v134_v35 = vsel %vm132_vm2, %v133_v54, %v501_v53  ;;  %v343_v18 = vsel %vm341_vm4, %v133_v54, %v501_v53 }
  0xd2   :  { %v131_v57 = vsel %vm129_vm5, %v499_v51, %v130_v55  ;;  %v340_v58 = vsel %vm338_vm3, %v499_v51, %v130_v55 }
  0xd3   :  { %v135_v59 = vsel %vm128_vm6, %v131_v57, %v134_v35  ;;  %v344_v60 = vsel %vm337_vm7, %v340_v58, %v343_v18 }
  0xd4   :  { %v136_v61 = vsel %vm125_vm8, nan, %v135_v59  ;;  %v345_v62 = vsel %vm125_vm8, nan, %v344_v60 }
  0xd5   :  { %241 = vst [vmem:[#allocation2] sm:$0xff] %v136_v61  ;;  %449 = vst [vmem:[#allocation2 + $0x10] sm:$0xff] %v345_v62 }
  0xd6   :  { %v503_v1 = vpop.eup %502 }
  0xd7   :  { %v505_v2 = vpop.eup %504  ;;  %v237_v3 = vxor.u32 2147483648, %v503_v1 }
  0xd8   :  { %v234_v4 = vxor.u32 2147483648, %v505_v2 }
  0xd9   :  { %v238_v5 = vsel %vm236_vm9, %v237_v3, %v505_v2  ;;  %v446_v11 = vsel %vm444_vm10, %v237_v3, %v505_v2 }
  0xda   :  { %v235_v6 = vsel %vm233_vm11, %v503_v1, %v234_v4  ;;  %v443_v7 = vsel %vm441_vm12, %v503_v1, %v234_v4 }
  0xdb   :  { %v239_v8 = vsel %vm232_vm13, %v235_v6, %v238_v5  ;;  %v447_v9 = vsel %vm440_vm14, %v443_v7, %v446_v11 }
  0xdc   :  { %v240_v10 = vsel %vm229_vm15, nan, %v239_v8  ;;  %v448_v16 = vsel %vm229_vm15, nan, %v447_v9 }
  0xdd   :  { %242 = vst [vmem:[#allocation2 + $0x8] sm:$0xff] %v240_v10  ;;  %450 = vst [vmem:[#allocation2 + $0x18] sm:$0xff] %v448_v16 }
  0xde   :  { %517 = shalt.err (!%p514_p4)
}
  0xdf   :  { %s518_s16 = scalar_lea.hbm %s635_s2, 512 }
  0xe0   :  { %p519_p5 = scmp.ne.s32.totalorder %s635_s2, %s518_s16  ;;  %p522_p6 = scmp.lt.u32.totalorder %s518_s16, %s635_s2 }
  0xe2   :  { %p524_p7 = pnand %p522_p6, %p519_p5 }
  0xe4   :  { %527 = shalt.err (!%p524_p7)
}
  0xe5   :  { %460 = dma.vmem_to_hbm [thread:$0]  %s458_s1, 512, %s635_s2, [#allocation3]  }
  0xe6   :  { %528 = dma.done.wait [#allocation3], 512  }
  0xe7   :  { %529 = vsyncadd [#allocation3], 4294966784 }
  0xe8   :  { %464 = vsyncpa [#allocation3], 1 }

</bundles_post_ra>
